<compile_context>
chip_gen: v5e
topology: v5e:2x2
jax: 0.10.0
libtpu: 0.0.40
codegen_flags: <defaults>
</compile_context>

<pallas_src>
import math

import jax
import jax.numpy as jnp
from jax.experimental import pallas as pl
from jax.experimental.pallas import tpu as pltpu

# ---------------------------------------------------------------------------
# Module configuration (small, consistent with the original model)
# ---------------------------------------------------------------------------
D_MODEL = 256        # d_model
MAX_VALUE = 1000     # max_value (size of the pe table)
BATCH = 2            # batch_size of `t`


# ---------------------------------------------------------------------------
# Buffer construction (mirrors IntEncoding.__init__ exactly)
# ---------------------------------------------------------------------------
def make_pe(d_model: int, max_value: int) -> jnp.ndarray:
    position = jnp.arange(max_value, dtype=jnp.float32)[:, None]            # [M, 1]
    div_term = jnp.exp(
        jnp.arange(0, d_model, 2, dtype=jnp.float32) * (-math.log(10000.0) / d_model)
    )                                                                        # [D/2]
    pe = jnp.zeros((max_value, 1, d_model), jnp.float32)
    pe = pe.at[:, 0, 0::2].set(jnp.sin(position * div_term))
    pe = pe.at[:, 0, 1::2].set(jnp.cos(position * div_term))
    return pe                                                                # [M, 1, D]


# ---------------------------------------------------------------------------
# Pallas kernel: the row has already been selected by the (data-dependent)
# input BlockSpec index_map, so the body is a straight VMEM copy.
# ---------------------------------------------------------------------------
def _int_encoding_kernel(t_smem, pe_row_ref, o_ref):
    del t_smem  # indices were consumed by the index_map (scalar prefetch)
    o_ref[...] = pe_row_ref[...]


def int_encoding(pe: jnp.ndarray, t: jnp.ndarray) -> jnp.ndarray:
    """pe: [max_value, 1, D] float32, t: [B] int32 -> [B, 1, D] float32."""
    B = t.shape[0]
    _, _, D = pe.shape

    return pl.pallas_call(
        _int_encoding_kernel,
        out_shape=jax.ShapeDtypeStruct((B, 1, D), pe.dtype),
        grid_spec=pltpu.PrefetchScalarGridSpec(
            num_scalar_prefetch=1,           # `t` lands in SMEM before the grid runs
            grid=(B,),
            in_specs=[
                # Data-dependent gather: block index along dim 0 is t[b].
                pl.BlockSpec((1, 1, D), lambda b, t_sm: (t_sm[b], 0, 0)),
            ],
            out_specs=pl.BlockSpec((1, 1, D), lambda b, t_sm: (b, 0, 0)),
        ),
        compiler_params=pltpu.CompilerParams(
            dimension_semantics=("arbitrary",),   # data-dependent input indexing
        ),
    )(t, pe)


# ---------------------------------------------------------------------------
if __name__ == "__main__":
    key = jax.random.PRNGKey(0)

    pe = make_pe(D_MODEL, MAX_VALUE)                                   # [1000, 1, 256]
    t = jax.random.randint(key, (BATCH,), 0, MAX_VALUE, dtype=jnp.int32)

    out = int_encoding(pe, t)
    out = jax.block_until_ready(out)

    # Shape contract of IntEncoding.forward: [batch_size, 1, d_model]
    assert out.shape == (BATCH, 1, D_MODEL)
    assert bool(jnp.all(jnp.isfinite(out)))

    # Exact reference: a plain table lookup.
    ref = pe[t]                                                        # [B, 1, D]
    if not jnp.array_equal(out, ref):
        max_err = float(jnp.max(jnp.abs(out - ref)))
        raise AssertionError(f"Pallas output mismatch vs reference, max_abs_err={max_err}")

    print("KERNEL_OK")
</pallas_src>

<mosaic_0001>
module attributes {stable_mosaic.version = 11 : i64} {
  func.func @_int_encoding_kernel(%arg0: i32, %arg1: memref<2xi32, #tpu.memory_space<smem>>, %arg2: memref<1x1x256xf32, #tpu.memory_space<vmem>>, %arg3: memref<1x1x256xf32, #tpu.memory_space<vmem>>) attributes {dimension_semantics = [#tpu.dimension_semantics<arbitrary>], iteration_bounds = array<i64: 2>, scalar_prefetch = 1 : i64, scratch_operands = 0 : i64, tpu.core_type = #tpu.core_type<tc>, window_params = [{transform_indices = @transform_0, window_bounds = array<i64: 1, 1, 256>}, {transform_indices = @transform_1, window_bounds = array<i64: 1, 1, 256>}]} {
    %c0 = arith.constant 0 : index
    %c0_0 = arith.constant 0 : index
    %c0_1 = arith.constant 0 : index
    %0 = vector.load %arg2[%c0, %c0_0, %c0_1] : memref<1x1x256xf32, #tpu.memory_space<vmem>>, vector<1x1x256xf32>
    %c0_2 = arith.constant 0 : index
    %c0_3 = arith.constant 0 : index
    %c0_4 = arith.constant 0 : index
    %1 = vector.load %arg3[%c0_2, %c0_3, %c0_4] : memref<1x1x256xf32, #tpu.memory_space<vmem>>, vector<1x1x256xf32>
    tpu.vector_store %arg3[%c0_2, %c0_3, %c0_4], %0 {strides = array<i32>} : memref<1x1x256xf32, #tpu.memory_space<vmem>>, vector<1x1x256xf32>,
    return
  }
  func.func @transform_0(%arg0: i32, %arg1: memref<2xi32, #tpu.memory_space<smem>>) -> (i32, i32, i32) {
    %0 = arith.index_cast %arg0 : i32 to index
    %1 = memref.load %arg1[%0] : memref<2xi32, #tpu.memory_space<smem>>
    %c0_i32 = arith.constant 0 : i32
    %c0_i32_0 = arith.constant 0 : i32
    %c0_i32_1 = arith.constant 0 : i32
    return %1, %c0_i32, %c0_i32_0 : i32, i32, i32
  }
  func.func @transform_1(%arg0: i32, %arg1: memref<2xi32, #tpu.memory_space<smem>>) -> (i32, i32, i32) {
    %c0_i32 = arith.constant 0 : i32
    %c0_i32_0 = arith.constant 0 : i32
    %c0_i32_1 = arith.constant 0 : i32
    return %arg0, %c0_i32, %c0_i32_0 : i32, i32, i32
  }
}

</mosaic_0001>

<bundles_post_ra>
// kernel: tpu_custom_call.1
= control target key start
LH: loop header
LB: loop body
LE: loop exit
PB: predicated region body
PF: predicated region fallthrough
CT: control target
= control target key end

     0   :  { %s462_s12 = smov [#allocation3]   ;;  %s641_s0 = inlined_call_operand.hbm [shape: s32[2], index: 0, kind: input, shape index: {}]   ;;  %s642_s1 = inlined_call_operand.hbm [shape: f32[1000,1,256], index: 1, kind: input, shape index: {}]   ;;  %s643_s2 = inlined_call_operand.hbm [shape: f32[2,1,256], index: 2, kind: output, shape index: {}]  }
   0x1   :  { %s8_s11 = sshll.u32 %s641_s0, 4  ;;  %s9_s11 = int_to_ptr.hbm [resolvable:$true] %s8_s11 }
   0x2   :  { %11 = dma.hbm_to_smem %s9_s11, 16, %s462_s12, [#allocation2] }
   0x3   :  { %424 = dma.done.wait [#allocation2], 16 }
   0x4   :  { %425 = vsyncadd [#allocation2], 4294967280 }
   0x5   :  { %14 = sfence }
   0x6   :  { %15 = vsyncpa [#allocation5], 0 }
   0x7   :  { %17 = vsyncpa [#allocation5 + $0x1], 0 }
   0x8   :  { %18 = vsyncpa [#allocation6], 0 }
   0x9   :  { %20 = vsyncpa [#allocation6 + $0x1], 0  ;;  %s481_s13 = smov 0   ;;  %s483_s14 = smov 0  }
   0xa   :  { %s485_s15 = smov 0   ;;  %s487_s16 = smov 0  }
   0xb   :  { %s489_s17 = smov 0   ;;  %s491_s0 = smov 0  }
   0xc   :  { %s493_s18 = smov 0  }
   0xd LB: > { %s515_s19 = sadd.s32 4294967295, %s460_s18   ;;  %s239_s20 = sadd.s32 4294967294, %s460_s18   ;;  %s460_s18 = sphi %s493_s18, %s658_s18   ;;  %s456_s0 = sphi %s491_s0, %s657_s0   ;;  %s452_s17 = sphi %s489_s17, %s656_s17   ;;  %s448_s16 = sphi %s487_s16, %s655_s16   ;;  %s444_s15 = sphi %s485_s15, %s654_s15   ;;  %s440_s14 = sphi %s483_s14, %s653_s14   ;;  %s436_s13 = sphi %s481_s13, %s652_s13  }
   0xe   : > { %s519_s21 = sadd.s32 1, %s460_s18   ;;  %s30_s22 = sld [smem:[#allocation3 + %s460_s18]] }
   0xf   : > { %s31_s23 = sld [smem:[#allocation3 + %s519_s21]]  ;;  %s35_s24 = sadd.s32 1, %s456_s0 }
  0x10   : > { %p42_p0 = scmp.ne.s32.totalorder %s456_s0, %s452_s17  ;;  %p43_p1 = scmp.eq.s32.totalorder %s460_s18, 0 }
  0x11   : > { %p48_p2 = scmp.ne.s32.totalorder %s452_s17, %s448_s16  ;;  %p49_p3 = scmp.eq.s32.totalorder %s515_s19, 0 }
  0x12   : > { %p529_p4 = por %p43_p1, %p42_p0  ;;  %s58_s26 = ssub.s32 %s460_s18, %s519_s21 }
  0x13   : > { %p535_p5 = por %p49_p3, %p48_p2  ;;  %p59_p6 = scmp.eq.s32.totalorder %s58_s26, 0 }
  0x14   : > { %s61_s28 = sadd.s32 1, %s444_s15  ;;  %p71_p7 = scmp.ne.s32.totalorder %s444_s15, %s440_s14 }
  0x15   : > { %s32_s29 = ssub.s32 %s30_s22, %s31_s23  ;;  %p72_p8 = scmp.eq.s32.totalorder %s515_s19, 1 }
  0x16   : > { %p33_p9 = scmp.eq.s32.totalorder %s32_s29, 0  ;;  %p77_p10 = scmp.ne.s32.totalorder %s440_s14, %s436_s13 }
  0x17   : > { %s546_s30 = scalar_select %p59_p6, %s444_s15, %s61_s28  }
  0x18   : > { %s549_s3 = scalar_select %p33_p9, %s456_s0, %s35_s24  }
  0x19   : > { %p551_p11 = por %p72_p8, %p71_p7  ;;  %p78_p12 = scmp.eq.s32.totalorder %s239_s20, 1 }
  0x1a   : > { %646 = sst [smem:[#allocation13_spill]] %s549_s3  ;;  %p241_p13 = scmp.ge.s32.totalorder %s460_s18, 2 }
  0x1b   : > { %p267_p0 = scmp.lt.s32.totalorder %s460_s18, 2  ;;  %p557_p1 = por %p78_p12, %p77_p10 }
  0x1c   : > { %s98_s6 = sand.u32 1, %s456_s0   ;;  %p244_p3 = scmp.ge.s32.totalorder %s460_s18, 1 }
  0x1d   : > { %s242_s7 = sshll.u32 %s98_s6, 1  ;;  %p564_p2 = pnand %p267_p0, %p529_p4 }
  0x1e   : > { %s251_s9 = scalar_select %p529_p4, [#allocation3], [#allocation8] }
  0x1f   : > { %s252_s10 = scalar_select %p529_p4, %s460_s18, 0 }
  0x20   : > { %s660_s9 = smov (!%p267_p0, %s251_s9), [#allocation9]  ;;  %p116_p6 = scmp.lt.s32.totalorder %s460_s18, 3 }
  0x21   : > { %s662_s10 = smov (!%p267_p0, %s252_s10), 0  ;;  %s102_s16 = scalar_lea.vmem [#allocation4], %s242_s7 }
  0x22   : > { %s103_s11 = sld [smem:[%s660_s9 + %s662_s10]]  ;;  %p575_p7 = pnand %p244_p3, %p116_p6 }
  0x23   : > { %s111_s20 = sshll.u32 %s102_s16, 4  ;;  %s99_s28 = scalar_lea.sflag [#allocation5], %s98_s6  ;;  %s112_s20 = int_to_ptr.vmem [resolvable:$true] %s111_s20 }
  0x24   : > { %p342_p8 = pneg %p564_p2 }
  0x28   : > { %s243_s22 = sshll.u32 %s103_s11, 1  ;;  %s345_s11 = scalar_lea.hbm %s642_s1, 2000 }
  0x29   : > { %s107_s26 = scalar_lea.hbm %s642_s1, %s243_s22 }
  0x2a   : > { %s109_s25 = sshll.u32 %s107_s26, 4  ;;  %s110_s25 = int_to_ptr.hbm [resolvable:$true] %s109_s25 }
  0x2b   : > { %s338_s29 = sshra.s32 %s110_s25, 4  ;;  %s339_s29 = int_to_ptr.hbm [resolvable:$true] %s338_s29 }
  0x2c   : > { %s340_s9 = scalar_lea.hbm %s339_s29, 2  ;;  %p346_p12 = scmp.lt.s32.totalorder %s339_s29, %s642_s1 }
  0x2d   : > { %p341_p4 = scmp.ne.s32.totalorder %s339_s29, %s340_s9  ;;  %p347_p0 = scmp.lt.s32.totalorder %s345_s11, %s340_s9 }
  0x2f   : > { %p343_p9 = pnand %p342_p8, %p341_p4  ;;  %p348_p3 = por %p347_p0, %p346_p12 }
  0x31   : > { %p344_p10 = pneg %p343_p9 }
  0x33   : > { %p349_p6 = pnand %p348_p3, %p344_p10 }
  0x35   : > { %352 = shalt.err (!%p349_p6)
}
  0x36   : > { %262 = dma.hbm_to_vmem [thread:$0]  (!%p564_p2), %s110_s25, 32, %s112_s20, %s99_s28  }
  0x37   : > { %120 = sbr.rel (%p575_p7) target bundleno = 77 (0x4d), region = 24  ;;  %s122_s6 = sand.u32 (!%p575_p7), 1, %s452_s17  }
  0x38   : > { %s245_s22 = sshll.u32 (!%p575_p7), %s122_s6, 1  ;;  %s123_s23 = scalar_lea.sflag (!%p575_p7), [#allocation5], %s122_s6 }
  0x39   : > { %s126_s24 = scalar_lea.vmem (!%p575_p7), [#allocation4], %s245_s22 }
  0x3c   : > { %427 = dma.done.wait (%p535_p5), %s123_s23, 32  }
  0x3d   : > { %429 = vsyncadd (%p535_p5), %s123_s23, 4294967264  ;;  %s143_s3 = sand.u32 1, %s440_s14   ;;  %s248_s26 = sshll.u32 %s515_s19, 1  ;;  %v148_v0 = vlaneseq  ;;  %v147_v1 = vld [vmem:[%s126_s24] sm:$0x3] }
  0x3e   : > { %s246_s8 = sshll.u32 %s143_s3, 1  ;;  %s164_s25 = scalar_lea.hbm %s643_s2, %s248_s26 }
  0x3f   : > { %s145_s28 = scalar_lea.vmem [#allocation7], %s246_s8  ;;  %s168_s9 = sshll.u32 %s164_s25, 4  ;;  %vm150_vm0 = vcmp.lt.s32.totalorder %v148_v0, 256  ;;  %s169_s9 = int_to_ptr.hbm [resolvable:$true] %s168_s9 }
  0x40   : > { %s166_s29 = sshll.u32 %s145_s28, 4  ;;  %152 = vst.msk [vmem:[%s145_s28] sm:$0x3] %vm150_vm0, %v147_v1  ;;  %s154_s27 = scalar_lea.sflag [#allocation6], %s143_s3  ;;  %s167_s29 = int_to_ptr.vmem [resolvable:$true] %s166_s29 }
  0x41   : > { %s382_s10 = sshra.s32 %s169_s9, 4  ;;  %s388_s16 = scalar_lea.hbm %s643_s2, 4  ;;  %s383_s10 = int_to_ptr.hbm [resolvable:$true] %s382_s10 }
  0x42   : > { %s384_s7 = scalar_lea.hbm %s383_s10, 2  ;;  %p389_p4 = scmp.lt.s32.totalorder %s383_s10, %s643_s2 }
  0x43   : > { %p385_p5 = scmp.ne.s32.totalorder %s383_s10, %s384_s7  ;;  %p390_p8 = scmp.lt.s32.totalorder %s388_s16, %s384_s7 }
  0x45   : > { %p386_p2 = pnand %p385_p5, %p551_p11  ;;  %p391_p9 = por %p390_p8, %p389_p4 }
  0x47   : > { %p387_p7 = pneg %p386_p2 }
  0x49   : > { %p392_p10 = pnand %p391_p9, %p387_p7 }
  0x4b   : > { %395 = shalt.err (!%p392_p10)
}
  0x4c   : > { %255 = dma.vmem_to_hbm [thread:$0]  (%p551_p11), %s167_s29, 32, %s169_s9, %s154_s27  }
  0x4d PF: > { %s180_s23 = sand.u32 1, %s436_s13   ;;  %p264_p12 = pnand %p241_p13, %p557_p1 }
  0x4e   : > { %s181_s24 = scalar_lea.sflag [#allocation6], %s180_s23 }
  0x4f   : > { %p265_p0 = pneg %p264_p12 }
  0x51   : > { %431 = dma.done.wait (%p265_p0), %s181_s24, 32  }
  0x52   : > { %433 = vsyncadd (%p265_p0), %s181_s24, 4294967264  ;;  %s651_s4 = sld [smem:[#allocation13_spill]]  ;;  %p23_p11 = scmp.ge.s32.totalorder %s519_s21, 4  }
  0x53   : > { %s652_s13 = smov %s440_s14  ;;  %s653_s14 = smov %s444_s15 }
  0x54   : > { %s654_s15 = smov %s546_s30  ;;  %s655_s16 = smov %s452_s17 }
  0x55   : > { %s656_s17 = smov %s456_s0  ;;  %s658_s18 = smov %s519_s21 }
  0x56   :  { %25 = sbr.rel (!%p23_p11) target bundleno = 13 (0xd), region = 69 }
  0x58   : > { %s657_s0 = smov %s651_s4 }
  0x5b   :  { %187 = vsyncpa [#allocation5], 1 }
  0x5c   :  { %189 = vsyncpa [#allocation5 + $0x1], 1 }
  0x5d   :  { %190 = vsyncpa [#allocation6], 1 }
  0x5e   :  { %192 = vsyncpa [#allocation6 + $0x1], 1 }

</bundles_post_ra>
